<compile_context>
chip_gen: v5e
topology: v5e:2x2
jax: 0.10.0
libtpu: 0.0.40
codegen_flags: <defaults>
</compile_context>

<pallas_src>
import jax
import jax.numpy as jnp
from jax.experimental import pallas as pl
from jax.experimental.pallas import tpu as pltpu

HIDDEN = 512
LANE = 128
SUBLANE = 8
MAX_TB = 512  # batch tile; small enough for v7x VMEM, big enough to pipeline


def _round_up(n, m):
    return ((n + m - 1) // m) * m


def bias_net_kernel(x_ref, w1_ref, b1_ref, w2_ref, b2_ref, o_ref):
    # x_ref : (TB, K_pad)     bf16
    # w1_ref: (K_pad, 512)    bf16   (pre-transposed, K zero-padded)
    # b1_ref: (1, 512)        f32
    # w2_ref: (512, N_pad)    bf16   (pre-transposed, N zero-padded)
    # b2_ref: (1, N_pad)      f32
    # o_ref : (TB, N_pad)     f32
    h = jnp.dot(x_ref[...], w1_ref[...], preferred_element_type=jnp.float32)
    h = jnp.tanh(h + b1_ref[...])                       # f32 epilogue
    y = jnp.dot(h.astype(jnp.bfloat16), w2_ref[...],
                preferred_element_type=jnp.float32)
    o_ref[...] = y + b2_ref[...]


def bias_net_forward(x, w1, b1, w2, b2):
    """x: (B, D_in) f32; w1: (512, D_in); b1: (512,); w2: (D_out, 512);
    b2: (D_out,)  ->  (B, D_out) f32  (same semantics as the torch module)."""
    B, d_in = x.shape
    d_out = w2.shape[0]

    # --- pad shapes to TPU-friendly tiles -------------------------------
    k_pad = _round_up(d_in, LANE)            # dense contraction lanes
    n_pad = _round_up(d_out, LANE)           # lane-dense output stores
    tb = min(MAX_TB, _round_up(B, SUBLANE))  # batch tile (multiple of 8)
    b_pad = _round_up(B, tb)

    x_p = jnp.zeros((b_pad, k_pad), jnp.bfloat16).at[:B, :d_in].set(
        x.astype(jnp.bfloat16))
    w1_p = jnp.zeros((k_pad, HIDDEN), jnp.bfloat16).at[:d_in, :].set(
        w1.T.astype(jnp.bfloat16))
    b1_p = b1.reshape(1, HIDDEN).astype(jnp.float32)
    w2_p = jnp.zeros((HIDDEN, n_pad), jnp.bfloat16).at[:, :d_out].set(
        w2.T.astype(jnp.bfloat16))
    b2_p = jnp.zeros((1, n_pad), jnp.float32).at[:, :d_out].set(
        b2.reshape(1, d_out).astype(jnp.float32))

    grid = (b_pad // tb,)

    out_padded = pl.pallas_call(
        bias_net_kernel,
        out_shape=jax.ShapeDtypeStruct((b_pad, n_pad), jnp.float32),
        grid=grid,
        in_specs=[
            pl.BlockSpec((tb, k_pad), lambda i: (i, 0)),        # x tile
            pl.BlockSpec((k_pad, HIDDEN), lambda i: (0, 0)),    # w1 resident
            pl.BlockSpec((1, HIDDEN), lambda i: (0, 0)),        # b1 resident
            pl.BlockSpec((HIDDEN, n_pad), lambda i: (0, 0)),    # w2 resident
            pl.BlockSpec((1, n_pad), lambda i: (0, 0)),         # b2 resident
        ],
        out_specs=pl.BlockSpec((tb, n_pad), lambda i: (i, 0)),
        compiler_params=pltpu.CompilerParams(
            dimension_semantics=("parallel",),
        ),
    )(x_p, w1_p, b1_p, w2_p, b2_p)

    return out_padded[:B, :d_out]


def init_linear_params(key, in_features, out_features, dtype=jnp.float32):
    """Deterministic init mimicking torch.nn.Linear default (U(-k, k), k=1/sqrt(fan_in))."""
    k_w, k_b = jax.random.split(key)
    bound = 1.0 / jnp.sqrt(jnp.asarray(in_features, dtype))
    w = jax.random.uniform(k_w, (out_features, in_features), dtype, -bound, bound)
    b = jax.random.uniform(k_b, (out_features,), dtype, -bound, bound)
    return w, b


if __name__ == "__main__":
    key = jax.random.PRNGKey(0)
    k_x, k_l1, k_l2 = jax.random.split(key, 3)

    # Small shapes consistent with Bias_Net(input_size, output_size)
    batch = 8
    input_size = 32
    output_size = 16

    x = jax.random.normal(k_x, (batch, input_size), jnp.float32)
    w1, b1 = init_linear_params(k_l1, input_size, HIDDEN)    # (512, in), (512,)
    w2, b2 = init_linear_params(k_l2, HIDDEN, output_size)   # (out, 512), (out,)

    out = bias_net_forward(x, w1, b1, w2, b2)
    out = jax.block_until_ready(out)

    # Pure-JAX f32 reference of the same forward semantics (bf16 MXU inputs in
    # the kernel => slightly relaxed tolerance).
    ref = jnp.tanh(x @ w1.T + b1) @ w2.T + b2
    assert out.shape == (batch, output_size)
    assert jnp.allclose(out, ref, atol=2e-2, rtol=2e-2), (
        float(jnp.max(jnp.abs(out - ref))))

    print("KERNEL_OK")
</pallas_src>

<mosaic_0001>
module attributes {stable_mosaic.version = 11 : i64} {
  func.func @bias_net_kernel(%arg0: i32, %arg1: memref<8x128xbf16, #tpu.memory_space<vmem>>, %arg2: memref<128x512xbf16, #tpu.memory_space<vmem>>, %arg3: memref<1x512xf32, #tpu.memory_space<vmem>>, %arg4: memref<512x128xbf16, #tpu.memory_space<vmem>>, %arg5: memref<1x128xf32, #tpu.memory_space<vmem>>, %arg6: memref<8x128xf32, #tpu.memory_space<vmem>>) attributes {dimension_semantics = [#tpu.dimension_semantics<parallel>], iteration_bounds = array<i64: 1>, scalar_prefetch = 0 : i64, scratch_operands = 0 : i64, tpu.core_type = #tpu.core_type<tc>, window_params = [{transform_indices = @transform_0, window_bounds = array<i64: 8, 128>}, {pipeline_mode = #tpu.pipeline_mode<synchronous>, transform_indices = @transform_1, window_bounds = array<i64: 128, 512>}, {pipeline_mode = #tpu.pipeline_mode<synchronous>, transform_indices = @transform_2, window_bounds = array<i64: 1, 512>}, {pipeline_mode = #tpu.pipeline_mode<synchronous>, transform_indices = @transform_3, window_bounds = array<i64: 512, 128>}, {pipeline_mode = #tpu.pipeline_mode<synchronous>, transform_indices = @transform_4, window_bounds = array<i64: 1, 128>}, {transform_indices = @transform_5, window_bounds = array<i64: 8, 128>}]} {
    %c0 = arith.constant 0 : index
    %c0_0 = arith.constant 0 : index
    %0 = vector.load %arg1[%c0, %c0_0] : memref<8x128xbf16, #tpu.memory_space<vmem>>, vector<8x128xbf16>
    %c0_1 = arith.constant 0 : index
    %c0_2 = arith.constant 0 : index
    %1 = vector.load %arg2[%c0_1, %c0_2] : memref<128x512xbf16, #tpu.memory_space<vmem>>, vector<128x512xbf16>
    %cst = arith.constant dense<0.000000e+00> : vector<8x512xf32>
    %2 = tpu.matmul %0, %1, %cst {dimension_numbers = #tpu.dot_dimension_numbers<[1], [0], [0], [1], [0, 0, 1, 1], [], []>} : vector<8x128xbf16>, vector<128x512xbf16>, vector<8x512xf32> -> vector<8x512xf32>
    %c0_3 = arith.constant 0 : index
    %c0_4 = arith.constant 0 : index
    %3 = vector.load %arg3[%c0_3, %c0_4] : memref<1x512xf32, #tpu.memory_space<vmem>>, vector<1x512xf32>
    %4 = vector.broadcast %3 : vector<1x512xf32> to vector<8x512xf32>
    %5 = arith.addf %2, %4 : vector<8x512xf32>
    %6 = math.tanh %5 : vector<8x512xf32>
    %7 = arith.truncf %6 : vector<8x512xf32> to vector<8x512xbf16>
    %c0_5 = arith.constant 0 : index
    %c0_6 = arith.constant 0 : index
    %8 = vector.load %arg4[%c0_5, %c0_6] : memref<512x128xbf16, #tpu.memory_space<vmem>>, vector<512x128xbf16>
    %cst_7 = arith.constant dense<0.000000e+00> : vector<8x128xf32>
    %9 = tpu.matmul %7, %8, %cst_7 {dimension_numbers = #tpu.dot_dimension_numbers<[1], [0], [0], [1], [0, 0, 1, 1], [], []>} : vector<8x512xbf16>, vector<512x128xbf16>, vector<8x128xf32> -> vector<8x128xf32>
    %c0_8 = arith.constant 0 : index
    %c0_9 = arith.constant 0 : index
    %10 = vector.load %arg5[%c0_8, %c0_9] : memref<1x128xf32, #tpu.memory_space<vmem>>, vector<1x128xf32>
    %11 = vector.broadcast %10 : vector<1x128xf32> to vector<8x128xf32>
    %12 = arith.addf %9, %11 : vector<8x128xf32>
    %c0_10 = arith.constant 0 : index
    %c0_11 = arith.constant 0 : index
    %13 = vector.load %arg6[%c0_10, %c0_11] : memref<8x128xf32, #tpu.memory_space<vmem>>, vector<8x128xf32>
    tpu.vector_store %arg6[%c0_10, %c0_11], %12 {strides = array<i32>} : memref<8x128xf32, #tpu.memory_space<vmem>>, vector<8x128xf32>,
    return
  }
  func.func @transform_0(%arg0: i32) -> (i32, i32) {
    %c0_i32 = arith.constant 0 : i32
    %c0_i32_0 = arith.constant 0 : i32
    return %arg0, %c0_i32 : i32, i32
  }
  func.func @transform_1(%arg0: i32) -> (i32, i32) {
    %c0_i32 = arith.constant 0 : i32
    %c0_i32_0 = arith.constant 0 : i32
    %c0_i32_1 = arith.constant 0 : i32
    return %c0_i32, %c0_i32_0 : i32, i32
  }
  func.func @transform_2(%arg0: i32) -> (i32, i32) {
    %c0_i32 = arith.constant 0 : i32
    %c0_i32_0 = arith.constant 0 : i32
    %c0_i32_1 = arith.constant 0 : i32
    return %c0_i32, %c0_i32_0 : i32, i32
  }
  func.func @transform_3(%arg0: i32) -> (i32, i32) {
    %c0_i32 = arith.constant 0 : i32
    %c0_i32_0 = arith.constant 0 : i32
    %c0_i32_1 = arith.constant 0 : i32
    return %c0_i32, %c0_i32_0 : i32, i32
  }
  func.func @transform_4(%arg0: i32) -> (i32, i32) {
    %c0_i32 = arith.constant 0 : i32
    %c0_i32_0 = arith.constant 0 : i32
    %c0_i32_1 = arith.constant 0 : i32
    return %c0_i32, %c0_i32_0 : i32, i32
  }
  func.func @transform_5(%arg0: i32) -> (i32, i32) {
    %c0_i32 = arith.constant 0 : i32
    %c0_i32_0 = arith.constant 0 : i32
    return %arg0, %c0_i32 : i32, i32
  }
}

</mosaic_0001>

<bundles_post_ra>
// kernel: tpu_custom_call.1
= control target key start
LH: loop header
LB: loop body
LE: loop exit
PB: predicated region body
PF: predicated region fallthrough
CT: control target
= control target key end

     0   :  { %10 = vsyncpa [#allocation3], 0  ;;  %s1198_s0 = inlined_call_operand.hbm [shape: bf16[8,128], index: 0, kind: input, shape index: {}]   ;;  %s1199_s1 = inlined_call_operand.hbm [shape: bf16[128,512], index: 1, kind: input, shape index: {}]   ;;  %s1200_s2 = inlined_call_operand.hbm [shape: f32[1,512], index: 2, kind: input, shape index: {}]   ;;  %s1201_s3 = inlined_call_operand.hbm [shape: bf16[512,128], index: 3, kind: input, shape index: {}]   ;;  %s1202_s4 = inlined_call_operand.vmem [shape: f32[1,128], index: 4, kind: input, shape index: {}]   ;;  %s1203_s5 = inlined_call_operand.hbm [shape: f32[8,128], index: 5, kind: output, shape index: {}]  }
   0x1   :  { %11 = vsyncpa [#allocation6], 0 }
   0x2   :  { %12 = vsyncpa [#allocation9], 0  ;;  %s29_s20 = sshll.u32 %s1199_s1, 4  ;;  %s30_s20 = int_to_ptr.hbm [resolvable:$true] %s29_s20 }
   0x3   :  { %13 = vsyncpa [#allocation4], 0  ;;  %s1141_s21 = smov [#allocation5]   ;;  %s19_s25 = sshll.u32 %s1198_s0, 4  ;;  %s20_s25 = int_to_ptr.hbm [resolvable:$true] %s19_s25 }
   0x4   :  { %s31_s22 = sshll.u32 %s1141_s21, 4  ;;  %s1142_s26 = smov 256   ;;  %s32_s22 = int_to_ptr.vmem [resolvable:$true] %s31_s22 }
   0x5   :  { %s1143_s27 = smov 16   ;;  %s1144_s28 = smov [#allocation2]  }
   0x6   :  { %37 = dma.hbm_to_vmem [thread:$0]  %s30_s20, 4096, %s32_s22, [#allocation6], %s1142_s26, %s1142_s26, %s1143_s27  }
   0x7   :  { %s21_s29 = sshll.u32 %s1144_s28, 4  ;;  %s43_s7 = sshll.u32 %s1200_s2, 4  ;;  %s22_s29 = int_to_ptr.vmem [resolvable:$true] %s21_s29  ;;  %s44_s7 = int_to_ptr.hbm [resolvable:$true] %s43_s7 }
   0x8   :  { %24 = dma.hbm_to_vmem [thread:$0]  %s20_s25, 64, %s22_s29, [#allocation3]  }
   0x9   :  { %s53_s9 = sshll.u32 %s1201_s3, 4  ;;  %s1145_s10 = smov [#allocation7]   ;;  %s54_s9 = int_to_ptr.hbm [resolvable:$true] %s53_s9 }
   0xa   :  { %s45_s11 = sshll.u32 %s1145_s10, 4  ;;  %s1146_s0 = smov [#allocation8]   ;;  %s46_s11 = int_to_ptr.vmem [resolvable:$true] %s45_s11 }
   0xb   :  { %48 = dma.hbm_to_vmem [thread:$0]  %s44_s7, 64, %s46_s11, [#allocation6]  }
   0xc   :  { %s55_s12 = sshll.u32 %s1146_s0, 4  ;;  %s1147_s13 = smov 64   ;;  %s56_s12 = int_to_ptr.vmem [resolvable:$true] %s55_s12 }
   0xd   :  { %s1148_s14 = smov 4  }
   0xe   :  { %61 = dma.hbm_to_vmem [thread:$0]  %s54_s9, 4096, %s56_s12, [#allocation9], %s1147_s13, %s1147_s13, %s1148_s14  }
   0xf   :  { %1133 = dma.done.wait [#allocation3], 64  }
  0x10   :  { %1134 = vsyncadd [#allocation3], 4294967232 }
  0x11   :  { %1135 = dma.done.wait [#allocation6], 4160  }
  0x12   :  { %1136 = vsyncadd [#allocation6], 4294963136 }
  0x13   :  { %1137 = dma.done.wait [#allocation9], 4096  }
  0x14   :  { %1138 = vsyncadd [#allocation9], 4294963200  ;;  %v797_v0 = vld [vmem:[#allocation5 + $0xe8] sm:$0xf]  ;;  %v962_v1 = vld [vmem:[#allocation5 + $0xf4] sm:$0xf0] }
  0x15   :  { %v960_v2 = vld [vmem:[#allocation5 + $0xec] sm:$0xf]  ;;  %v798_v3 = vor.u32 %v962_v1, %v797_v0  ;;  %v799_v4 = vld [vmem:[#allocation5 + $0xf8] sm:$0xf0]  ;;  %v789_v5 = vld [vmem:[#allocation5 + $0xe0] sm:$0xf] }
  0x16   :  { %v961_v6 = vld [vmem:[#allocation5 + $0xec] sm:$0xf0]  ;;  %v802_v7 = vor.u32 %v960_v2, %v799_v4  ;;  %v959_v9 = vld [vmem:[#allocation5 + $0xe4] sm:$0xf]  ;;  %v791_v10 = vld [vmem:[#allocation5 + $0xf0] sm:$0xf0] }
  0x17   :  { %v790_v8 = vor.u32 %v961_v6, %v789_v5  ;;  %v781_v11 = vld [vmem:[#allocation5 + $0xc8] sm:$0xf]  ;;  %309 = vmatpush.bf16.msra.mxu2 %v798_v3  ;;  %v794_v12 = vor.u32 %v959_v9, %v791_v10  ;;  %v958_v13 = vld [vmem:[#allocation5 + $0xd4] sm:$0xf0]  ;;  %v956_v14 = vld [vmem:[#allocation5 + $0xcc] sm:$0xf] }
  0x18   :  { %v783_v15 = vld [vmem:[#allocation5 + $0xd8] sm:$0xf0]  ;;  %322 = vmatpush.bf16.msra.mxu3 %v802_v7  ;;  %v782_v16 = vor.u32 %v958_v13, %v781_v11  ;;  %v773_v18 = vld [vmem:[#allocation5 + $0xc0] sm:$0xf]  ;;  %v957_v19 = vld [vmem:[#allocation5 + $0xcc] sm:$0xf0] }
  0x19   :  { %283 = vmatpush.bf16.msra.mxu0 %v790_v8  ;;  %v786_v17 = vor.u32 %v956_v14, %v783_v15  ;;  %v955_v20 = vld [vmem:[#allocation5 + $0xc4] sm:$0xf]  ;;  %296 = vmatpush.bf16.msra.mxu1 %v794_v12  ;;  %v774_v21 = vor.u32 %v957_v19, %v773_v18  ;;  %v775_v22 = vld [vmem:[#allocation5 + $0xd0] sm:$0xf0]  ;;  %v765_v23 = vld [vmem:[#allocation5 + $0xa8] sm:$0xf] }
  0x1a   :  { %v954_v24 = vld [vmem:[#allocation5 + $0xb4] sm:$0xf0]  ;;  %v778_v25 = vor.u32 %v955_v20, %v775_v22  ;;  %v952_v26 = vld [vmem:[#allocation5 + $0xac] sm:$0xf]  ;;  %v767_v27 = vld [vmem:[#allocation5 + $0xb8] sm:$0xf0] }
  0x1b   :  { %v757_v28 = vld [vmem:[#allocation5 + $0xa0] sm:$0xf]  ;;  %310 = vmatpush.bf16.msra.mxu2 %v782_v16  ;;  %v766_v29 = vor.u32 %v954_v24, %v765_v23  ;;  %v953_v30 = vld [vmem:[#allocation5 + $0xac] sm:$0xf0]  ;;  %v951_v31 = vld [vmem:[#allocation5 + $0xa4] sm:$0xf]  ;;  %v770_v33 = vor.u32 %v952_v26, %v767_v27 }
  0x1c   :  { %v759_v32 = vld [vmem:[#allocation5 + $0xb0] sm:$0xf0]  ;;  %323 = vmatpush.bf16.msra.mxu3 %v786_v17  ;;  %v758_v34 = vor.u32 %v953_v30, %v757_v28  ;;  %v749_v35 = vld [vmem:[#allocation5 + $0x88] sm:$0xf]  ;;  %v950_v36 = vld [vmem:[#allocation5 + $0x94] sm:$0xf0] }
  0x1d   :  { %284 = vmatpush.bf16.msra.mxu0 %v774_v21  ;;  %v948_v37 = vld [vmem:[#allocation5 + $0x8c] sm:$0xf]  ;;  %297 = vmatpush.bf16.msra.mxu1 %v778_v25  ;;  %v762_v38 = vor.u32 %v951_v31, %v759_v32  ;;  %v751_v39 = vld [vmem:[#allocation5 + $0x98] sm:$0xf0]  ;;  %v741_v40 = vld [vmem:[#allocation5 + $0x80] sm:$0xf]  ;;  %v750_v44 = vor.u32 %v950_v36, %v749_v35 }
  0x1e   :  { %v949_v41 = vld [vmem:[#allocation5 + $0x8c] sm:$0xf0]  ;;  %v947_v42 = vld [vmem:[#allocation5 + $0x84] sm:$0xf]  ;;  %v743_v43 = vld [vmem:[#allocation5 + $0x90] sm:$0xf0]  ;;  %v754_v45 = vor.u32 %v948_v37, %v751_v39 }
  0x1f   :  { %311 = vmatpush.bf16.msra.mxu2 %v766_v29  ;;  %v742_v46 = vor.u32 %v949_v41, %v741_v40  ;;  %v733_v47 = vld [vmem:[#allocation5 + $0x68] sm:$0xf]  ;;  %v946_v48 = vld [vmem:[#allocation5 + $0x74] sm:$0xf0]  ;;  %v944_v49 = vld [vmem:[#allocation5 + $0x6c] sm:$0xf]  ;;  %v746_v50 = vor.u32 %v947_v42, %v743_v43 }
  0x20   :  { %324 = vmatpush.bf16.msra.mxu3 %v770_v33  ;;  %v735_v51 = vld [vmem:[#allocation5 + $0x78] sm:$0xf0]  ;;  %v725_v52 = vld [vmem:[#allocation5 + $0x60] sm:$0xf]  ;;  %v945_v53 = vld [vmem:[#allocation5 + $0x6c] sm:$0xf0]  ;;  %v734_v56 = vor.u32 %v946_v48, %v733_v47 }
  0x21   :  { %285 = vmatpush.bf16.msra.mxu0 %v758_v34  ;;  %298 = vmatpush.bf16.msra.mxu1 %v762_v38  ;;  %v943_v54 = vld [vmem:[#allocation5 + $0x64] sm:$0xf]  ;;  %v727_v55 = vld [vmem:[#allocation5 + $0x70] sm:$0xf0]  ;;  %v738_v57 = vor.u32 %v944_v49, %v735_v51  ;;  %v726_v58 = vor.u32 %v945_v53, %v725_v52  ;;  %v717_v59 = vld [vmem:[#allocation5 + $0x48] sm:$0xf] }
  0x22   :  { %v942_v60 = vld [vmem:[#allocation5 + $0x54] sm:$0xf0]  ;;  %v940_v61 = vld [vmem:[#allocation5 + $0x4c] sm:$0xf]  ;;  %v730_v62 = vor.u32 %v943_v54, %v727_v55  ;;  %v719_v63 = vld [vmem:[#allocation5 + $0x58] sm:$0xf0] }
  0x23   :  { %312 = vmatpush.bf16.msra.mxu2 %v750_v44  ;;  %v709_v0 = vld [vmem:[#allocation5 + $0x40] sm:$0xf]  ;;  %v941_v1 = vld [vmem:[#allocation5 + $0x4c] sm:$0xf0]  ;;  %v939_v2 = vld [vmem:[#allocation5 + $0x44] sm:$0xf]  ;;  %v718_v4 = vor.u32 %v942_v60, %v717_v59  ;;  %v722_v5 = vor.u32 %v940_v61, %v719_v63 }
  0x24   :  { %325 = vmatpush.bf16.msra.mxu3 %v754_v45  ;;  %v711_v3 = vld [vmem:[#allocation5 + $0x50] sm:$0xf0]  ;;  %v710_v6 = vor.u32 %v941_v1, %v709_v0  ;;  %v701_v7 = vld [vmem:[#allocation5 + $0x28] sm:$0xf]  ;;  %v938_v8 = vld [vmem:[#allocation5 + $0x34] sm:$0xf0] }
  0x25   :  { %286 = vmatpush.bf16.msra.mxu0 %v742_v46  ;;  %299 = vmatpush.bf16.msra.mxu1 %v746_v50  ;;  %v936_v9 = vld [vmem:[#allocation5 + $0x2c] sm:$0xf]  ;;  %v714_v10 = vor.u32 %v939_v2, %v711_v3  ;;  %v703_v11 = vld [vmem:[#allocation5 + $0x38] sm:$0xf0]  ;;  %v693_v12 = vld [vmem:[#allocation5 + $0x20] sm:$0xf]  ;;  %v702_v16 = vor.u32 %v938_v8, %v701_v7 }
  0x26   :  { %v937_v13 = vld [vmem:[#allocation5 + $0x2c] sm:$0xf0]  ;;  %v935_v14 = vld [vmem:[#allocation5 + $0x24] sm:$0xf]  ;;  %v695_v15 = vld [vmem:[#allocation5 + $0x30] sm:$0xf0]  ;;  %v706_v17 = vor.u32 %v936_v9, %v703_v11 }
  0x27   :  { %313 = vmatpush.bf16.msra.mxu2 %v734_v56  ;;  %v694_v18 = vor.u32 %v937_v13, %v693_v12  ;;  %v685_v19 = vld [vmem:[#allocation5 + $0x8] sm:$0xf]  ;;  %v934_v20 = vld [vmem:[#allocation5 + $0x14] sm:$0xf0]  ;;  %v932_v21 = vld [vmem:[#allocation5 + $0xc] sm:$0xf]  ;;  %v698_v22 = vor.u32 %v935_v14, %v695_v15 }
  0x28   :  { %326 = vmatpush.bf16.msra.mxu3 %v738_v57  ;;  %v687_v23 = vld [vmem:[#allocation5 + $0x18] sm:$0xf0]  ;;  %v677_v24 = vld [vmem:[#allocation5] sm:$0xf]  ;;  %v933_v25 = vld [vmem:[#allocation5 + $0xc] sm:$0xf0]  ;;  %v686_v28 = vor.u32 %v934_v20, %v685_v19 }
  0x29   :  { %287 = vmatpush.bf16.msra.mxu0 %v726_v58  ;;  %300 = vmatpush.bf16.msra.mxu1 %v730_v62  ;;  %v931_v26 = vld [vmem:[#allocation5 + $0x4] sm:$0xf]  ;;  %v679_v27 = vld [vmem:[#allocation5 + $0x10] sm:$0xf0]  ;;  %v690_v29 = vor.u32 %v932_v21, %v687_v23  ;;  %v678_v30 = vor.u32 %v933_v25, %v677_v24  ;;  %v970_v32 = vld [vmem:[#allocation8 + $0x38] sm:$0xff]  ;;  %s1149_s15 = smov [#allocation10]  }
  0x2a   :  { %v682_v31 = vor.u32 %v931_v26, %v679_v27  ;;  %v978_v33 = vld [vmem:[#allocation8 + $0x78] sm:$0xff]  ;;  %v969_v36 = vld [vmem:[#allocation8 + $0x30] sm:$0xff]  ;;  %v968_v40 = vld [vmem:[#allocation8 + $0x28] sm:$0xff]  ;;  %s661_s16 = sshll.u32 %s1149_s15, 4  ;;  %s663_s19 = sshll.u32 %s1203_s5, 4  ;;  %s662_s16 = int_to_ptr.vmem [resolvable:$true] %s661_s16  ;;  %s664_s19 = int_to_ptr.hbm [resolvable:$true] %s663_s19 }
  0x2b   :  { %314 = vmatpush.bf16.msra.mxu2 %v718_v4  ;;  %v80_v34 = vld [vmem:[#allocation2] sm:$0xf]  ;;  %v977_v38 = vld [vmem:[#allocation8 + $0x70] sm:$0xff]  ;;  %v976_v42 = vld [vmem:[#allocation8 + $0x68] sm:$0xff] }
  0x2c   :  { %327 = vmatpush.bf16.msra.mxu3 %v722_v5  ;;  %v986_v35 = vld [vmem:[#allocation8 + $0xb8] sm:$0xff]  ;;  %v985_v39 = vld [vmem:[#allocation8 + $0xb0] sm:$0xff]  ;;  %v984_v43 = vld [vmem:[#allocation8 + $0xa8] sm:$0xff] }
  0x2d   :  { %288 = vmatpush.bf16.msra.mxu0 %v710_v6  ;;  %301 = vmatpush.bf16.msra.mxu1 %v714_v10  ;;  %v994_v37 = vld [vmem:[#allocation8 + $0xf8] sm:$0xff]  ;;  %v993_v41 = vld [vmem:[#allocation8 + $0xf0] sm:$0xff]  ;;  %v967_v44 = vld [vmem:[#allocation8 + $0x20] sm:$0xff] }
  0x2e   :  { %v992_v45 = vld [vmem:[#allocation8 + $0xe8] sm:$0xff]  ;;  %v975_v46 = vld [vmem:[#allocation8 + $0x60] sm:$0xff]  ;;  %v966_v48 = vld [vmem:[#allocation8 + $0x18] sm:$0xff] }
  0x2f   :  { %315 = vmatpush.bf16.msra.mxu2 %v702_v16  ;;  %v983_v47 = vld [vmem:[#allocation8 + $0xa0] sm:$0xff]  ;;  %v974_v50 = vld [vmem:[#allocation8 + $0x58] sm:$0xff]  ;;  %v965_v51 = vld [vmem:[#allocation8 + $0x10] sm:$0xff] }
  0x30   :  { %328 = vmatpush.bf16.msra.mxu3 %v706_v17  ;;  %v991_v49 = vld [vmem:[#allocation8 + $0xe0] sm:$0xff]  ;;  %v982_v52 = vld [vmem:[#allocation8 + $0x98] sm:$0xff]  ;;  %v973_v54 = vld [vmem:[#allocation8 + $0x50] sm:$0xff] }
  0x31   :  { %289 = vmatpush.bf16.msra.mxu0 %v694_v18  ;;  %302 = vmatpush.bf16.msra.mxu1 %v698_v22  ;;  %v990_v53 = vld [vmem:[#allocation8 + $0xd8] sm:$0xff]  ;;  %v964_v55 = vld [vmem:[#allocation8 + $0x8] sm:$0xff]  ;;  %v981_v56 = vld [vmem:[#allocation8 + $0x90] sm:$0xff] }
  0x32   :  { %v989_v57 = vld [vmem:[#allocation8 + $0xd0] sm:$0xff]  ;;  %v972_v58 = vld [vmem:[#allocation8 + $0x48] sm:$0xff]  ;;  %v963_v59 = vld [vmem:[#allocation8] sm:$0xff] }
  0x33   :  { %316 = vmatpush.bf16.msra.mxu2 %v686_v28  ;;  %v980_v60 = vld [vmem:[#allocation8 + $0x88] sm:$0xff]  ;;  %v971_v62 = vld [vmem:[#allocation8 + $0x40] sm:$0xff]  ;;  %v113_v1 = vld [vmem:[#allocation7] sm:$0xf] }
  0x34   :  { %329 = vmatpush.bf16.msra.mxu3 %v690_v29  ;;  %v988_v61 = vld [vmem:[#allocation8 + $0xc8] sm:$0xff]  ;;  %v979_v63 = vld [vmem:[#allocation8 + $0x80] sm:$0xff]  ;;  %v115_v2 = vperm.slane %v113_v1, 0  ;;  %v116_v3 = vperm.slane %v113_v1, 1  ;;  %v117_v8 = vperm.slane %v113_v1, 2  ;;  %v118_v9 = vperm.slane %v113_v1, 3 }
  0x35   :  { %290 = vmatpush.bf16.msra.mxu0 %v678_v30  ;;  %303 = vmatpush.bf16.msra.mxu1 %v682_v31  ;;  %v987_v0 = vld [vmem:[#allocation8 + $0xc0] sm:$0xff]  ;;  %v1004_v26 = vld [vmem:[%s1202_s4] ss:$0 sm:$0xff] }
  0x36   :  { %317 = vmatmul.bf16.vlgmr.msra.gmra.mxu2 %v80_v34 }
  0x37   :  { %330 = vmatmul.bf16.vlgmr.msra.gmra.mxu3 %v80_v34  ;;  %629 = vmatpush.bf16.msrb.mxu2 %v986_v35 }
  0x38   :  { %291 = vmatmul.bf16.vlgmr.msra.gmra.mxu0 %v80_v34  ;;  %304 = vmatmul.bf16.vlgmr.msra.gmra.mxu1 %v80_v34 }
  0x39   :  { %603 = vmatpush.bf16.msrb.mxu0 %v970_v32  ;;  %616 = vmatpush.bf16.msrb.mxu1 %v978_v33 }
  0x3a   :  { %642 = vmatpush.bf16.msrb.mxu3 %v994_v37 }
  0x3b   :  { %630 = vmatpush.bf16.msrb.mxu2 %v985_v39 }
  0x3d   :  { %604 = vmatpush.bf16.msrb.mxu0 %v969_v36  ;;  %617 = vmatpush.bf16.msrb.mxu1 %v977_v38 }
  0x3e   :  { %643 = vmatpush.bf16.msrb.mxu3 %v993_v41 }
  0x3f   :  { %631 = vmatpush.bf16.msrb.mxu2 %v984_v43 }
  0x41   :  { %605 = vmatpush.bf16.msrb.mxu0 %v968_v40  ;;  %618 = vmatpush.bf16.msrb.mxu1 %v976_v42 }
  0x42   :  { %644 = vmatpush.bf16.msrb.mxu3 %v992_v45 }
  0x43   :  { %632 = vmatpush.bf16.msrb.mxu2 %v983_v47 }
  0x45   :  { %606 = vmatpush.bf16.msrb.mxu0 %v967_v44  ;;  %619 = vmatpush.bf16.msrb.mxu1 %v975_v46 }
  0x46   :  { %645 = vmatpush.bf16.msrb.mxu3 %v991_v49 }
  0x47   :  { %633 = vmatpush.bf16.msrb.mxu2 %v982_v52 }
  0x49   :  { %607 = vmatpush.bf16.msrb.mxu0 %v966_v48  ;;  %620 = vmatpush.bf16.msrb.mxu1 %v974_v50 }
  0x4a   :  { %646 = vmatpush.bf16.msrb.mxu3 %v990_v53 }
  0x4b   :  { %634 = vmatpush.bf16.msrb.mxu2 %v981_v56 }
  0x4d   :  { %608 = vmatpush.bf16.msrb.mxu0 %v965_v51  ;;  %621 = vmatpush.bf16.msrb.mxu1 %v973_v54 }
  0x4e   :  { %647 = vmatpush.bf16.msrb.mxu3 %v989_v57 }
  0x4f   :  { %635 = vmatpush.bf16.msrb.mxu2 %v980_v60 }
  0x51   :  { %609 = vmatpush.bf16.msrb.mxu0 %v964_v55  ;;  %622 = vmatpush.bf16.msrb.mxu1 %v972_v58 }
  0x52   :  { %648 = vmatpush.bf16.msrb.mxu3 %v988_v61 }
  0x53   :  { %636 = vmatpush.bf16.msrb.mxu2 %v979_v63 }
  0x55   :  { %610 = vmatpush.bf16.msrb.mxu0 %v963_v59  ;;  %623 = vmatpush.bf16.msrb.mxu1 %v971_v62 }
  0x56   :  { %649 = vmatpush.bf16.msrb.mxu3 %v987_v0 }
  0xb5   :  { %v292_v4 = vpop.f32.mrf.mxu0  ;;  %v305_v6 = vpop.f32.mrf.mxu1 }
  0xb6   :  { %v293_v5 = vadd.f32 %v292_v4, %v115_v2  ;;  %v306_v7 = vadd.f32 %v305_v6, %v116_v3 }
  0xb8   :  { %1005 = vtanh.f32 %v293_v5 }
  0xb9   :  { %1007 = vtanh.f32 %v306_v7  ;;  %v318_v10 = vpop.f32.mrf.mxu2 }
  0xba   :  { %v319_v11 = vadd.f32 %v318_v10, %v117_v8  ;;  %v331_v12 = vpop.f32.mrf.mxu3 }
  0xbb   :  { %v332_v13 = vadd.f32 %v331_v12, %v118_v9 }
  0xbc   :  { %1009 = vtanh.f32 %v319_v11 }
  0xbd   :  { %v294_v14 = vpop.f32.mrf.mxu0  ;;  %1011 = vtanh.f32 %v332_v13  ;;  %v307_v16 = vpop.f32.mrf.mxu1 }
  0xbe   :  { %v1006_v15 = vpop.eup %1005 }
  0xbf   :  { %v1008_v17 = vpop.eup %1007  ;;  %v339_v18 = vpack.c.bf16 %v1006_v15, %v1006_v15 }
  0xc0   :  { %v340_v19 = vpack.c.bf16 %v1008_v17, %v1008_v17 }
  0xc1   :  { %611 = vmatmul.bf16.vlgmr.msrb.gmra.mxu0 %v339_v18  ;;  %v320_v20 = vpop.f32.mrf.mxu2 }
  0xc2   :  { %624 = vmatmul.bf16.vlgmr.msrb.gmra.mxu1 %v340_v19  ;;  %v1010_v21 = vpop.eup %1009  ;;  %v333_v22 = vpop.f32.mrf.mxu3 }
  0xc3   :  { %v1012_v23 = vpop.eup %1011  ;;  %v341_v24 = vpack.c.bf16 %v1010_v21, %v1010_v21 }
  0xc4   :  { %v342_v25 = vpack.c.bf16 %v1012_v23, %v1012_v23 }
  0xc5   :  { %637 = vmatmul.bf16.vlgmr.msrb.gmra.mxu2 %v341_v24 }
  0xc6   :  { %650 = vmatmul.bf16.vlgmr.msrb.gmra.mxu3 %v342_v25 }
 0x13e   :  { %v612_v27 = vpop.f32.mrf.mxu0 }
 0x13f   :  { %v625_v28 = vpop.f32.mrf.mxu1  ;;  %v613_v29 = vadd.f32 %v1004_v26, %v612_v27 }
 0x141   :  { %v626_v30 = vadd.f32 %v625_v28, %v613_v29 }
 0x146   :  { %v614_v31 = vpop.f32.mrf.mxu0 }
 0x147   :  { %v627_v32 = vpop.f32.mrf.mxu1 }
 0x148   :  { %v638_v33 = vpop.f32.mrf.mxu2 }
 0x149   :  { %v639_v34 = vadd.f32 %v638_v33, %v626_v30  ;;  %v651_v35 = vpop.f32.mrf.mxu3 }
 0x14b   :  { %v652_v36 = vadd.f32 %v651_v35, %v639_v34 }
 0x14d   :  { %655 = vst [vmem:[#allocation10] sm:$0xff] %v652_v36 }
 0x14e   :  { %666 = dma.vmem_to_hbm [thread:$0]  %s662_s16, 128, %s664_s19, [#allocation4]  }
 0x150   :  { %v640_v37 = vpop.f32.mrf.mxu2 }
 0x151   :  { %v653_v38 = vpop.f32.mrf.mxu3 }
 0x152   :  { %1139 = dma.done.wait [#allocation4], 128  }
 0x153   :  { %1140 = vsyncadd [#allocation4], 4294967168 }
 0x154   :  { %671 = vsyncpa [#allocation3], 1 }
 0x155   :  { %672 = vsyncpa [#allocation6], 1 }
 0x156   :  { %673 = vsyncpa [#allocation9], 1 }
 0x157   :  { %674 = vsyncpa [#allocation4], 1 }

</bundles_post_ra>
